<compile_context>
chip_gen: v6e
topology: v6e:2x2x1
jax: 0.10.0
libtpu: 0.0.40
codegen_flags: <defaults>
</compile_context>

<pallas_src>
import functools

import jax
import jax.numpy as jnp
from jax.experimental import pallas as pl
from jax.experimental.pallas import tpu as pltpu


# ----------------------------------------------------------------------------
# Kernel helpers
# ----------------------------------------------------------------------------
def _conv_rmsnorm(x_ref, w_ref, b_ref, g_ref, m_ref, *, eps):
    """Conv1d(k=3, pad=1) + bias + RMSNorm on a lane-flattened (C_in, L) block."""
    l_blk = x_ref.shape[1]
    x = x_ref[...].astype(jnp.float32)                               # (C_in, L)

    # 3-tap conv == 3 channel-contraction matmuls on the unshifted slab.
    z0 = jnp.dot(w_ref[0], x, preferred_element_type=jnp.float32)    # needs x[:, j-1]
    z1 = jnp.dot(w_ref[1], x, preferred_element_type=jnp.float32)    # needs x[:, j]
    z2 = jnp.dot(w_ref[2], x, preferred_element_type=jnp.float32)    # needs x[:, j+1]

    # Shift tap outputs on the XLU; zero the single wrapped column per batch
    # segment (== conv zero padding, no bleed across batch boundaries).
    left = m_ref[0:1, :] * pltpu.roll(z0, 1, 1)            # rolled[:, j] = z0[:, j-1]
    right = m_ref[1:2, :] * pltpu.roll(z2, l_blk - 1, 1)   # rolled[:, j] = z2[:, j+1]
    y = z1 + left + right + b_ref[...]

    # RMSNorm over the channel (sublane) axis:
    #   F.normalize(y, dim=ch) * g * sqrt(C_out); sqrt(C_out) folded into g_ref.
    #   Clamping sum-of-squares at eps^2 == clamping the norm at eps.
    sumsq = jnp.sum(y * y, axis=0, keepdims=True)                    # (1, L)
    return y * jax.lax.rsqrt(jnp.maximum(sumsq, eps * eps)) * g_ref[...]


def _silu(y):
    # SiLU = y * sigmoid(y); tanh form keeps it a single EUP transcendental.
    return y * (0.5 * jnp.tanh(0.5 * y) + 0.5)


def _block_kernel_plain(x_ref, w_ref, b_ref, g_ref, m_ref, o_ref, *, eps):
    y = _conv_rmsnorm(x_ref, w_ref, b_ref, g_ref, m_ref, eps=eps)
    # TODO(synk): nn.Dropout is identity at p=0.0 / eval; training-mode dropout
    # would use pltpu.prng_seed / pltpu.prng_random_bits.
    o_ref[...] = _silu(y).astype(o_ref.dtype)


def _block_kernel_ss(x_ref, w_ref, b_ref, g_ref, m_ref, sc_ref, sh_ref, o_ref, *, eps):
    y = _conv_rmsnorm(x_ref, w_ref, b_ref, g_ref, m_ref, eps=eps)
    y = y * sc_ref[...] + sh_ref[...]          # scale already has +1 folded in
    o_ref[...] = _silu(y).astype(o_ref.dtype)


# ----------------------------------------------------------------------------
# Wrapper
# ----------------------------------------------------------------------------
def _pick_batch_block(bsz, n, target_lanes=1024):
    """Batches per grid step: lane width (b*n) must be a multiple of 128 (or
    span all of B*N), close to `target_lanes`, and leave grid >= 2 when
    possible so both v7x TensorCores get work."""
    best, best_key = bsz, None
    for b in range(1, bsz + 1):
        if bsz % b:
            continue
        lanes = b * n
        if lanes % 128 != 0 and b != bsz:
            continue
        key = (0 if (bsz // b) >= 2 else 1, abs(lanes - target_lanes))
        if best_key is None or key < best_key:
            best, best_key = b, key
    return best


def block_forward(x, w_conv, b_conv, g, scale_shift=None, *, b_blk=None, eps=1e-12):
    """Forward of `Block`.

    x          : (B, C_in, N) float32, PyTorch channels-first layout.
    w_conv     : (C_out, C_in, 3)  Conv1d weight.
    b_conv     : (C_out,)          Conv1d bias.
    g          : (C_out,) or (1, C_out, 1) RMSNorm gain.
    scale_shift: None or (scale, shift), each broadcastable to (B, C_out, 1).
    """
    bsz, c_in, n = x.shape
    c_out = w_conv.shape[0]

    if b_blk is None:
        b_blk = _pick_batch_block(bsz, n)
    b_blk = max(1, min(int(b_blk), bsz))
    while bsz % b_blk:
        b_blk -= 1
    l_blk = b_blk * n
    l_total = bsz * n
    grid = (bsz // b_blk,)

    # One-time layout plumbing / constant folding (wrapper-side, tiny).
    x_flat = jnp.transpose(x, (1, 0, 2)).reshape(c_in, l_total).astype(jnp.float32)
    w_t = jnp.transpose(w_conv, (2, 0, 1)).astype(jnp.float32)        # (3, C_out, C_in)
    b_col = b_conv.reshape(c_out, 1).astype(jnp.float32)
    g_col = (jnp.reshape(g, (-1,)) * (c_out ** 0.5)).reshape(c_out, 1).astype(jnp.float32)

    # Edge mask: zero the one rolled-in column per batch segment (row 0 = left
    # tap, row 1 = right tap).  Identical for every grid step -> DMA'd once.
    pos = jnp.arange(l_blk) % n
    edge_mask = jnp.stack([(pos != 0), (pos != n - 1)]).astype(jnp.float32)   # (2, L_blk)

    in_arrays = [x_flat, w_t, b_col, g_col, edge_mask]
    in_specs = [
        pl.BlockSpec((c_in, l_blk), lambda i: (0, i)),        # x (lane-flattened)
        pl.BlockSpec((3, c_out, c_in), lambda i: (0, 0, 0)),  # conv W, tap-major
        pl.BlockSpec((c_out, 1), lambda i: (0, 0)),           # conv bias
        pl.BlockSpec((c_out, 1), lambda i: (0, 0)),           # norm gain * sqrt(C_out)
        pl.BlockSpec((2, l_blk), lambda i: (0, 0)),           # conv edge mask
    ]

    if scale_shift is None:
        kernel = functools.partial(_block_kernel_plain, eps=eps)
    else:
        scale, shift = scale_shift
        sc = jnp.broadcast_to(jnp.asarray(scale, jnp.float32) + 1.0, (bsz, c_out, 1))
        sh = jnp.broadcast_to(jnp.asarray(shift, jnp.float32), (bsz, c_out, 1))
        sc_flat = jnp.broadcast_to(jnp.transpose(sc, (1, 0, 2)),
                                   (c_out, bsz, n)).reshape(c_out, l_total)
        sh_flat = jnp.broadcast_to(jnp.transpose(sh, (1, 0, 2)),
                                   (c_out, bsz, n)).reshape(c_out, l_total)
        in_arrays += [sc_flat, sh_flat]
        in_specs += [pl.BlockSpec((c_out, l_blk), lambda i: (0, i)),
                     pl.BlockSpec((c_out, l_blk), lambda i: (0, i))]
        kernel = functools.partial(_block_kernel_ss, eps=eps)

    flops = 2 * 3 * c_out * c_in * l_total + 12 * c_out * l_total
    bytes_accessed = 4 * sum(int(a.size) for a in in_arrays) + 4 * c_out * l_total
    cost = pl.CostEstimate(flops=flops,
                           transcendentals=(c_out + 1) * l_total,
                           bytes_accessed=bytes_accessed)

    out_flat = pl.pallas_call(
        kernel,
        out_shape=jax.ShapeDtypeStruct((c_out, l_total), x.dtype),
        grid_spec=pltpu.PrefetchScalarGridSpec(
            num_scalar_prefetch=0,
            grid=grid,
            in_specs=in_specs,
            out_specs=pl.BlockSpec((c_out, l_blk), lambda i: (0, i)),
        ),
        compiler_params=pltpu.CompilerParams(
            dimension_semantics=("parallel",),
            vmem_limit_bytes=32 * 1024 * 1024,
        ),
        cost_estimate=cost,
    )(*in_arrays)

    # Undo the lane flattening: (C_out, B*N) -> (B, C_out, N).
    return jnp.transpose(out_flat.reshape(c_out, bsz, n), (1, 0, 2))


# ----------------------------------------------------------------------------
# Pure-JAX reference (mirrors the PyTorch forward exactly)
# ----------------------------------------------------------------------------
def block_ref(x, w_conv, b_conv, g, scale_shift=None, eps=1e-12):
    g = jnp.reshape(g, (-1,))
    y = jax.lax.conv_general_dilated(
        x, w_conv, window_strides=(1,), padding=((1, 1),),
        dimension_numbers=("NCH", "OIH", "NCH"))
    y = y + b_conv[None, :, None]
    norm = jnp.sqrt(jnp.sum(y * y, axis=1, keepdims=True))
    y = y / jnp.maximum(norm, eps) * g[None, :, None] * (y.shape[1] ** 0.5)
    if scale_shift is not None:
        scale, shift = scale_shift
        y = y * (scale + 1.0) + shift
    return y * jax.nn.sigmoid(y)


# ----------------------------------------------------------------------------
# Main
# ----------------------------------------------------------------------------
if __name__ == "__main__":
    B, C_IN, C_OUT, N = 4, 8, 16, 128

    key = jax.random.PRNGKey(0)
    kx, kw, kb, kg, ks, kh = jax.random.split(key, 6)

    x = jax.random.normal(kx, (B, C_IN, N), jnp.float32)

    # Conv1d default init: uniform(-1/sqrt(fan_in), 1/sqrt(fan_in)), fan_in = C_in*k
    bound = 1.0 / ((C_IN * 3) ** 0.5)
    w_conv = jax.random.uniform(kw, (C_OUT, C_IN, 3), jnp.float32, -bound, bound)
    b_conv = jax.random.uniform(kb, (C_OUT,), jnp.float32, -bound, bound)
    # RMSNorm gain (init is ones; perturb slightly so it is exercised)
    g = 1.0 + 0.1 * jax.random.normal(kg, (C_OUT,), jnp.float32)

    scale = 0.1 * jax.random.normal(ks, (B, C_OUT, 1), jnp.float32)
    shift = 0.1 * jax.random.normal(kh, (B, C_OUT, 1), jnp.float32)

    # Path 1: no scale_shift
    y1 = jax.block_until_ready(block_forward(x, w_conv, b_conv, g))
    y1_ref = block_ref(x, w_conv, b_conv, g)
    assert y1.shape == (B, C_OUT, N)
    assert jnp.allclose(y1, y1_ref, atol=1e-4, rtol=1e-4), \
        "Pallas Block kernel mismatch (no scale_shift)"

    # Path 2: with scale_shift (as used inside ResnetBlock)
    y2 = jax.block_until_ready(block_forward(x, w_conv, b_conv, g, (scale, shift)))
    y2_ref = block_ref(x, w_conv, b_conv, g, (scale, shift))
    assert jnp.allclose(y2, y2_ref, atol=1e-4, rtol=1e-4), \
        "Pallas Block kernel mismatch (with scale_shift)"

    print("KERNEL_OK")
</pallas_src>

<mosaic_0001>
module attributes {stable_mosaic.version = 11 : i64} {
  func.func @_block_kernel_plain(%arg0: i32, %arg1: memref<8x256xf32, #tpu.memory_space<vmem>>, %arg2: memref<3x16x8xf32, #tpu.memory_space<vmem>>, %arg3: memref<16x1xf32, #tpu.memory_space<vmem>>, %arg4: memref<16x1xf32, #tpu.memory_space<vmem>>, %arg5: memref<2x256xf32, #tpu.memory_space<vmem>>, %arg6: memref<16x256xf32, #tpu.memory_space<vmem>>) attributes {dimension_semantics = [#tpu.dimension_semantics<parallel>], iteration_bounds = array<i64: 2>, scalar_prefetch = 0 : i64, scratch_operands = 0 : i64, tpu.core_type = #tpu.core_type<tc>, window_params = [{transform_indices = @transform_0, window_bounds = array<i64: 8, 256>}, {pipeline_mode = #tpu.pipeline_mode<synchronous>, transform_indices = @transform_1, window_bounds = array<i64: 3, 16, 8>}, {pipeline_mode = #tpu.pipeline_mode<synchronous>, transform_indices = @transform_2, window_bounds = array<i64: 16, 1>}, {pipeline_mode = #tpu.pipeline_mode<synchronous>, transform_indices = @transform_3, window_bounds = array<i64: 16, 1>}, {pipeline_mode = #tpu.pipeline_mode<synchronous>, transform_indices = @transform_4, window_bounds = array<i64: 2, 256>}, {transform_indices = @transform_5, window_bounds = array<i64: 16, 256>}]} {
    %c0 = arith.constant 0 : index
    %c0_0 = arith.constant 0 : index
    %0 = vector.load %arg1[%c0, %c0_0] : memref<8x256xf32, #tpu.memory_space<vmem>>, vector<8x256xf32>
    %c0_1 = arith.constant 0 : index
    %c0_2 = arith.constant 0 : index
    %c0_3 = arith.constant 0 : index
    %1 = vector.load %arg2[%c0_1, %c0_2, %c0_3] : memref<3x16x8xf32, #tpu.memory_space<vmem>>, vector<1x16x8xf32>
    %2 = vector.shape_cast %1 : vector<1x16x8xf32> to vector<16x8xf32>
    %cst = arith.constant dense<0.000000e+00> : vector<16x256xf32>
    %3 = tpu.matmul %2, %0, %cst {dimension_numbers = #tpu.dot_dimension_numbers<[1], [0], [0], [1], [0, 0, 1, 1], [], []>} : vector<16x8xf32>, vector<8x256xf32>, vector<16x256xf32> -> vector<16x256xf32>
    %c1 = arith.constant 1 : index
    %c0_4 = arith.constant 0 : index
    %c0_5 = arith.constant 0 : index
    %4 = vector.load %arg2[%c1, %c0_4, %c0_5] : memref<3x16x8xf32, #tpu.memory_space<vmem>>, vector<1x16x8xf32>
    %5 = vector.shape_cast %4 : vector<1x16x8xf32> to vector<16x8xf32>
    %cst_6 = arith.constant dense<0.000000e+00> : vector<16x256xf32>
    %6 = tpu.matmul %5, %0, %cst_6 {dimension_numbers = #tpu.dot_dimension_numbers<[1], [0], [0], [1], [0, 0, 1, 1], [], []>} : vector<16x8xf32>, vector<8x256xf32>, vector<16x256xf32> -> vector<16x256xf32>
    %c2 = arith.constant 2 : index
    %c0_7 = arith.constant 0 : index
    %c0_8 = arith.constant 0 : index
    %7 = vector.load %arg2[%c2, %c0_7, %c0_8] : memref<3x16x8xf32, #tpu.memory_space<vmem>>, vector<1x16x8xf32>
    %8 = vector.shape_cast %7 : vector<1x16x8xf32> to vector<16x8xf32>
    %cst_9 = arith.constant dense<0.000000e+00> : vector<16x256xf32>
    %9 = tpu.matmul %8, %0, %cst_9 {dimension_numbers = #tpu.dot_dimension_numbers<[1], [0], [0], [1], [0, 0, 1, 1], [], []>} : vector<16x8xf32>, vector<8x256xf32>, vector<16x256xf32> -> vector<16x256xf32>
    %c0_10 = arith.constant 0 : index
    %c0_11 = arith.constant 0 : index
    %10 = vector.load %arg5[%c0_10, %c0_11] : memref<2x256xf32, #tpu.memory_space<vmem>>, vector<1x256xf32>
    %c1_i32 = arith.constant 1 : i32
    %11 = tpu.dynamic_rotate %3 by %c1_i32 dim 1 : vector<16x256xf32>, i32 -> vector<16x256xf32>
    %12 = vector.broadcast %10 : vector<1x256xf32> to vector<16x256xf32>
    %13 = arith.mulf %12, %11 : vector<16x256xf32>
    %c1_12 = arith.constant 1 : index
    %c0_13 = arith.constant 0 : index
    %14 = vector.load %arg5[%c1_12, %c0_13] : memref<2x256xf32, #tpu.memory_space<vmem>>, vector<1x256xf32>
    %c255_i32 = arith.constant 255 : i32
    %15 = tpu.dynamic_rotate %9 by %c255_i32 dim 1 : vector<16x256xf32>, i32 -> vector<16x256xf32>
    %16 = vector.broadcast %14 : vector<1x256xf32> to vector<16x256xf32>
    %17 = arith.mulf %16, %15 : vector<16x256xf32>
    %18 = arith.addf %6, %13 : vector<16x256xf32>
    %19 = arith.addf %18, %17 : vector<16x256xf32>
    %c0_14 = arith.constant 0 : index
    %c0_15 = arith.constant 0 : index
    %20 = vector.load %arg3[%c0_14, %c0_15] : memref<16x1xf32, #tpu.memory_space<vmem>>, vector<16x1xf32>
    %21 = vector.broadcast %20 : vector<16x1xf32> to vector<16x256xf32>
    %22 = arith.addf %19, %21 : vector<16x256xf32>
    %23 = arith.mulf %22, %22 : vector<16x256xf32>
    %cst_16 = arith.constant dense<0.000000e+00> : vector<256xf32>
    %24 = vector.multi_reduction <add>, %23, %cst_16 [0] : vector<16x256xf32> to vector<256xf32>
    %25 = vector.shape_cast %24 : vector<256xf32> to vector<1x256xf32>
    %cst_17 = arith.constant 1.000000e-24 : f32
    %26 = vector.broadcast %cst_17 : f32 to vector<1x256xf32>
    %27 = arith.maximumf %25, %26 : vector<1x256xf32>
    %28 = math.rsqrt %27 : vector<1x256xf32>
    %29 = vector.broadcast %28 : vector<1x256xf32> to vector<16x256xf32>
    %30 = arith.mulf %22, %29 : vector<16x256xf32>
    %c0_18 = arith.constant 0 : index
    %c0_19 = arith.constant 0 : index
    %31 = vector.load %arg4[%c0_18, %c0_19] : memref<16x1xf32, #tpu.memory_space<vmem>>, vector<16x1xf32>
    %32 = vector.broadcast %31 : vector<16x1xf32> to vector<16x256xf32>
    %33 = arith.mulf %30, %32 : vector<16x256xf32>
    %cst_20 = arith.constant 5.000000e-01 : f32
    %34 = vector.broadcast %cst_20 : f32 to vector<16x256xf32>
    %35 = arith.mulf %34, %33 : vector<16x256xf32>
    %36 = math.tanh %35 : vector<16x256xf32>
    %cst_21 = arith.constant 5.000000e-01 : f32
    %37 = vector.broadcast %cst_21 : f32 to vector<16x256xf32>
    %38 = arith.mulf %37, %36 : vector<16x256xf32>
    %cst_22 = arith.constant 5.000000e-01 : f32
    %39 = vector.broadcast %cst_22 : f32 to vector<16x256xf32>
    %40 = arith.addf %38, %39 : vector<16x256xf32>
    %41 = arith.mulf %33, %40 : vector<16x256xf32>
    %c0_23 = arith.constant 0 : index
    %c0_24 = arith.constant 0 : index
    %42 = vector.load %arg6[%c0_23, %c0_24] : memref<16x256xf32, #tpu.memory_space<vmem>>, vector<16x256xf32>
    tpu.vector_store %arg6[%c0_23, %c0_24], %41 {strides = array<i32>} : memref<16x256xf32, #tpu.memory_space<vmem>>, vector<16x256xf32>,
    return
  }
  func.func @transform_0(%arg0: i32) -> (i32, i32) {
    %c0_i32 = arith.constant 0 : i32
    %c0_i32_0 = arith.constant 0 : i32
    return %c0_i32, %arg0 : i32, i32
  }
  func.func @transform_1(%arg0: i32) -> (i32, i32, i32) {
    %c0_i32 = arith.constant 0 : i32
    %c0_i32_0 = arith.constant 0 : i32
    %c0_i32_1 = arith.constant 0 : i32
    %c0_i32_2 = arith.constant 0 : i32
    return %c0_i32, %c0_i32_0, %c0_i32_1 : i32, i32, i32
  }
  func.func @transform_2(%arg0: i32) -> (i32, i32) {
    %c0_i32 = arith.constant 0 : i32
    %c0_i32_0 = arith.constant 0 : i32
    %c0_i32_1 = arith.constant 0 : i32
    return %c0_i32, %c0_i32_0 : i32, i32
  }
  func.func @transform_3(%arg0: i32) -> (i32, i32) {
    %c0_i32 = arith.constant 0 : i32
    %c0_i32_0 = arith.constant 0 : i32
    %c0_i32_1 = arith.constant 0 : i32
    return %c0_i32, %c0_i32_0 : i32, i32
  }
  func.func @transform_4(%arg0: i32) -> (i32, i32) {
    %c0_i32 = arith.constant 0 : i32
    %c0_i32_0 = arith.constant 0 : i32
    %c0_i32_1 = arith.constant 0 : i32
    return %c0_i32, %c0_i32_0 : i32, i32
  }
  func.func @transform_5(%arg0: i32) -> (i32, i32) {
    %c0_i32 = arith.constant 0 : i32
    %c0_i32_0 = arith.constant 0 : i32
    return %c0_i32, %arg0 : i32, i32
  }
}

</mosaic_0001>

<bundles_post_ra>
// kernel: tpu_custom_call.1
= control target key start
LH: loop header
LB: loop body
LE: loop exit
PB: predicated region body
PF: predicated region fallthrough
CT: control target
= control target key end

     0   :  { %10 = vsyncpa [#allocation3], 0  ;;  %s1038_s0 = inlined_call_operand.vmem [shape: f32[8,512], index: 0, kind: input, shape index: {}]   ;;  %s1039_s1 = inlined_call_operand.vmem [shape: f32[3,16,8], index: 1, kind: input, shape index: {}]   ;;  %s1040_s2 = inlined_call_operand.vmem [shape: f32[16,1], index: 2, kind: input, shape index: {}]   ;;  %s1041_s3 = inlined_call_operand.vmem [shape: f32[16,1], index: 3, kind: input, shape index: {}]   ;;  %s1042_s4 = inlined_call_operand.vmem [shape: f32[2,256], index: 4, kind: input, shape index: {}]   ;;  %s1043_s5 = inlined_call_operand.hbm [shape: f32[16,512], index: 5, kind: output, shape index: {}]  }
   0x1   :  { %12 = vsyncpa [#allocation3 + $0x1], 0  ;;  %s895_s18 = smov 0   ;;  %s897_s19 = smov 0  }
   0x2   :  { %s899_s20 = smov 0   ;;  %s901_s21 = smov 0  }
   0x3 LB: > { %s916_s22 = sadd.s32 4294967295, %s855_s21   ;;  %s709_s23 = sadd.s32 4294967294, %s855_s21   ;;  %s855_s21 = sphi %s901_s21, %s1049_s21   ;;  %s851_s20 = sphi %s899_s20, %s1048_s20   ;;  %s847_s19 = sphi %s897_s19, %s1047_s19   ;;  %s843_s18 = sphi %s895_s18, %s1046_s18  }
   0x4   : > { %s920_s24 = sadd.s32 1, %s855_s21   ;;  %s135_s25 = sadd.s32 1, %s851_s20 }
   0x5   : > { %s132_s26 = ssub.s32 %s855_s21, %s920_s24  ;;  %p145_p0 = scmp.ne.s32.totalorder %s851_s20, %s847_s19 }
   0x6   : > { %p133_p1 = scmp.eq.s32.totalorder %s132_s26, 0  ;;  %p146_p2 = scmp.eq.s32.totalorder %s916_s22, 1 }
   0x7   : > { %p151_p3 = scmp.ne.s32.totalorder %s847_s19, %s843_s18  ;;  %p152_p4 = scmp.eq.s32.totalorder %s709_s23, 1 }
   0x8   : > { %s931_s27 = scalar_select %p133_p1, %s851_s20, %s135_s25  }
   0x9   : > { %p933_p5 = por %p146_p2, %p145_p0  ;;  %p937_p6 = por %p152_p4, %p151_p3 }
   0xa   : > { %p712_p7 = scmp.ge.s32.totalorder %s855_s21, 1  ;;  %p191_p8 = scmp.lt.s32.totalorder %s855_s21, 3 }
   0xc   : > { %p192_p9 = pnand %p712_p7, %p191_p8 }
   0xd   : > { %s714_s30 = sshll.u32 (!%p192_p9), %s916_s22, 1  ;;  %s860_s7 = smov (!%p192_p9), 127  }
   0xe   : > { %195 = sbr.rel (%p192_p9) target bundleno = 438 (0x1b6), region = 40  ;;  %p220_p10 = scmp.lt.s32.totalorder (!%p192_p9), %s714_s30, 3 }
   0xf   : > { %s216_s26 = sand.u32 (!%p192_p9), 1, %s847_s19   ;;  %s732_s8 = sshll.u32 (!%p192_p9), %s916_s22, 8 }
  0x10   : > { %s996_s11 = scalar_lea.hbm (!%p192_p9), %s1043_s5, %s732_s8  ;;  %s998_s22 = scalar_lea.sflag (!%p192_p9), [#allocation3], %s216_s26 }
  0x11   : > { %s861_s13 = smov (!%p192_p9), [#allocation2]  }
  0x12   : > { %s799_s14 = sshll.u32 (!%p192_p9), %s861_s13, 4  ;;  %s800_s14 = int_to_ptr.vmem [resolvable:$false] %s799_s14 }
  0x13   : > { %v857_v0 = vmov 0.0   ;;  %s1051_s30 = smov (!%p220_p10, %s714_s30), 3  ;;  %v228_v1 = vld [vmem:[%s1039_s1] sm:$0xff]  ;;  %vm230_vm0 = vcmask 64512   ;;  %v229_v4 = vld [vmem:[%s1039_s1 + $0x8] sm:$0xff]  ;;  %v718_v6 = vld [vmem:[%s1039_s1 + $0x10] sm:$0xff]  ;;  %v412_v23 = vlaneseq }
  0x14   : > { %301 = vmatprep.mubr.f32.mxu0 %v857_v0  ;;  %307 = vmatprep.mubr.f32.mxu1 %v857_v0  ;;  %s715_s6 = sshll.u32 %s1051_s30, 3  ;;  %v720_v5 = vld [vmem:[%s1039_s1 + $0x20] sm:$0xff]  ;;  %v721_v7 = vld [vmem:[%s1039_s1 + $0x28] sm:$0xff]  ;;  %v719_v8 = vld [vmem:[%s1039_s1 + $0x18] sm:$0xff]  ;;  %v858_v9 = vmov 0   ;;  %s713_s30 = sshll.u32 %s216_s26, 5 }
  0x15   : > { %s223_s9 = scalar_lea.vmem %s1038_s0, %s715_s6  ;;  %781 = vset.pattern.permute.xlu0 %v858_v9  ;;  %782 = vset.pattern.permute.xlu1 %v858_v9  ;;  %s859_s6 = smov 1   ;;  %v551_v18 = vld [vmem:[%s1040_s2] sm:$0xff]  ;;  %v552_v19 = vld [vmem:[%s1040_s2 + $0x8] sm:$0xff]  ;;  %v421_v26 = vshrl.u32 %v412_v23, 7  ;;  %v413_v28 = vand.u32 127, %v412_v23 }
  0x16   : > { %v227_v2 = vld [vmem:[%s223_s9 + $0x8] sm:$0xff]  ;;  %v226_v3 = vld [vmem:[%s223_s9] sm:$0xff]  ;;  %s801_s15 = scalar_lea.vmem %s800_s14, 1024 }
  0x17   : > { %267 = vmatprep.subr.mxu0 %v227_v2  ;;  %733 = vmatprep.subr.mxu1 %v227_v2  ;;  %v594_v20 = vld [vmem:[%s1041_s3 + $0x8] sm:$0xff]  ;;  %v593_v21 = vld [vmem:[%s1041_s3] sm:$0xff]  ;;  %v422_v31 = vsub.s32 0, %v421_v26  ;;  %v426_v32 = vsub.s32 1, %v421_v26  ;;  %vm414_vm1 = vcmp.lt.s32.totalorder %v413_v28, 1  ;;  %vm444_vm2 = vcmp.lt.s32.totalorder %v413_v28, 127 }
  0x18   : > { %268 = vmatpush1.msra.mxu0 %v226_v3  ;;  %734 = vmatpush1.msra.mxu1 %v226_v3  ;;  %v403_v34 = vld [vmem:[%s1042_s4] ss:$2 sm:$0x3]  ;;  %v724_v36 = vld [vmem:[%s1042_s4 + $0x1] ss:$2 sm:$0x3] }
  0x19   : > { %716 = vmatmul.mubr.msk.f32.vlgmr.msra.gmra.mxu0 %vm230_vm0, %v228_v1  ;;  %717 = vmatmul.mubr.msk.f32.vlgmr.msra.gmra.mxu1 %vm230_vm0, %v229_v4  ;;  %v423_v37 = vrot.slane %v403_v34, %v422_v31  ;;  %v427_v38 = vrot.slane %v403_v34, %v426_v32  ;;  %v453_v42 = vrot.slane %v724_v36, %v422_v31 }
  0x1a   : > { %356 = vmatprep.subr.mxu1 %v227_v2  ;;  %390 = vmatprep.mubr.f32.mxu1 %v857_v0  ;;  %v457_v43 = vrot.slane %v724_v36, %v426_v32 }
  0x1b   : > { %357 = vmatpush1.msra.mxu1 %v226_v3  ;;  %500 = vmatprep.subr.mxu0 %v227_v2 }
  0x1c   : > { %501 = vmatpush1.msra.mxu0 %v226_v3  ;;  %534 = vmatprep.mubr.f32.mxu0 %v857_v0 }
  0x1d   : > { %722 = vmatmul.mubr.msk.f32.vlgmr.msra.gmra.mxu1 %vm230_vm0, %v720_v5  ;;  %725 = vmatmul.mubr.msk.f32.vlgmr.msra.gmra.mxu0 %vm230_vm0, %v718_v6 }
  0x1e   : > { %396 = vmatprep.mubr.f32.mxu1 %v857_v0  ;;  %540 = vmatprep.mubr.f32.mxu0 %v857_v0 }
  0x21   : > { %723 = vmatmul.mubr.msk.f32.gmra.mxu1 %vm230_vm0, %v721_v7  ;;  %726 = vmatmul.mubr.msk.f32.gmra.mxu0 %vm230_vm0, %v719_v8 }
  0xd9   : > { %v303_v10 = vpop.f32.mrf.mxu0  ;;  %v309_v11 = vpop.f32.mrf.mxu1 }
  0xda   : > { %404 = vrot.lane.b32.xlu0 %v303_v10, %s859_s6 }
  0xdb   : > { %v305_v12 = vpop.f32.mrf.mxu0  ;;  %v311_v13 = vpop.f32.mrf.mxu1 }
  0xdc   : > { %408 = vrot.lane.b32.xlu1 %v305_v12, %s859_s6 }
  0xdd   : > { %v392_v14 = vpop.f32.mrf.mxu1  ;;  %v536_v30 = vpop.f32.mrf.mxu0 }
  0xde   : > { %406 = vrot.lane.b32.xlu0 %v309_v11, %s859_s6 }
  0xdf   : > { %v394_v15 = vpop.f32.mrf.mxu1  ;;  %v538_v35 = vpop.f32.mrf.mxu0 }
  0xe0   : > { %410 = vrot.lane.b32.xlu1 %v311_v13, %s859_s6  ;;  %s218_s6 = scalar_lea.vmem [#allocation2], %s713_s30 }
  0xe1   : > { %v398_v16 = vpop.f32.mrf.mxu1  ;;  %v542_v47 = vpop.f32.mrf.mxu0 }
  0xe2   : > { %436 = vrot.lane.b32.xlu0 %v392_v14, %s860_s7 }
  0xe3   : > { %v400_v17 = vpop.f32.mrf.mxu1  ;;  %v544_v58 = vpop.f32.mrf.mxu0 }
  0xe4   : > { %438 = vrot.lane.b32.xlu1 %v398_v16, %s860_s7 }
  0xe6   : > { %440 = vrot.lane.b32.xlu0 %v394_v15, %s860_s7 }
  0xe8   : > { %442 = vrot.lane.b32.xlu1 %v400_v17, %s860_s7  ;;  %s647_s7 = sshll.u32 %s218_s6, 4  ;;  %s991_s7 = int_to_ptr.vmem [resolvable:$true] %s647_s7 }
  0xe9   : > { %s795_s12 = scalar_lea.vmem %s991_s7, 512  ;;  %p802_p0 = scmp.lt.s32.totalorder %s991_s7, %s800_s14 }
  0xea   : > { %555 = vperm.xlu0 %781, %v551_v18   ;;  %p796_p11 = scmp.ne.s32.totalorder %s991_s7, %s795_s12  ;;  %p803_p1 = scmp.lt.s32.totalorder %s801_s15, %s795_s12 }
  0xec   : > { %560 = vperm.xlu1 %782, %v552_v19   ;;  %p797_p12 = pnand %p796_p11, %p933_p5  ;;  %p804_p2 = por %p803_p1, %p802_p0 }
  0xee   : > { %602 = vperm.xlu0 %781, %v594_v20   ;;  %p798_p13 = pneg %p797_p12 }
  0xf0   : > { %597 = vperm.xlu1 %782, %v593_v21   ;;  %p805_p3 = pnand %p804_p2, %p798_p13 }
 0x14c   : > { %v405_v22 = vpop.permute.xlu0 %404 }
 0x14e   : > { %v409_v24 = vpop.permute.xlu1 %408 }
 0x14f   : > { %v415_v40 = vsel %vm414_vm1, %v405_v22, %v409_v24  ;;  %v417_v41 = vsel %vm414_vm1, %v409_v24, %v405_v22 }
 0x150   : > { %v407_v25 = vpop.permute.xlu0 %406  ;;  %v430_v50 = vmul.f32 %v423_v37, %v417_v41  ;;  %v431_v51 = vmul.f32 %v427_v38, %v415_v40 }
 0x152   : > { %v411_v27 = vpop.permute.xlu1 %410  ;;  %v537_v59 = vadd.f32 %v536_v30, %v430_v50  ;;  %v539_v60 = vadd.f32 %v538_v35, %v431_v51 }
 0x153   : > { %v416_v45 = vsel %vm414_vm1, %v407_v25, %v411_v27  ;;  %v418_v46 = vsel %vm414_vm1, %v411_v27, %v407_v25 }
 0x154   : > { %v437_v29 = vpop.permute.xlu0 %436  ;;  %v432_v54 = vmul.f32 %v423_v37, %v418_v46  ;;  %v433_v55 = vmul.f32 %v427_v38, %v416_v45 }
 0x156   : > { %v439_v33 = vpop.permute.xlu1 %438  ;;  %v543_v63 = vadd.f32 %v542_v47, %v432_v54  ;;  %v545_v0 = vadd.f32 %v544_v58, %v433_v55 }
 0x158   : > { %v441_v39 = vpop.permute.xlu0 %440 }
 0x159   : > { %v445_v48 = vsel %vm444_vm2, %v437_v29, %v441_v39  ;;  %v447_v49 = vsel %vm444_vm2, %v441_v39, %v437_v29 }
 0x15a   : > { %v443_v44 = vpop.permute.xlu1 %442  ;;  %v460_v56 = vmul.f32 %v453_v42, %v445_v48  ;;  %v461_v57 = vmul.f32 %v457_v43, %v447_v49 }
 0x15b   : > { %v446_v52 = vsel %vm444_vm2, %v439_v33, %v443_v44  ;;  %v448_v53 = vsel %vm444_vm2, %v443_v44, %v439_v33 }
 0x15c   : > { %v462_v61 = vmul.f32 %v453_v42, %v446_v52  ;;  %v463_v62 = vmul.f32 %v457_v43, %v448_v53  ;;  %v547_v1 = vadd.f32 %v537_v59, %v460_v56  ;;  %v548_v2 = vadd.f32 %v539_v60, %v461_v57 }
 0x15e   : > { %v549_v6 = vadd.f32 %v543_v63, %v462_v61  ;;  %v550_v7 = vadd.f32 %v545_v0, %v463_v62 }
 0x165   : > { %v556_v3 = vpop.permute.xlu0 %555 }
 0x166   : > { %v563_v4 = vadd.f32 %v556_v3, %v547_v1  ;;  %v564_v5 = vadd.f32 %v556_v3, %v548_v2 }
 0x167   : > { %v561_v8 = vpop.permute.xlu1 %560 }
 0x168   : > { %v565_v9 = vadd.f32 %v561_v8, %v549_v6  ;;  %v566_v10 = vadd.f32 %v561_v8, %v550_v7  ;;  %v567_v11 = vmul.f32 %v563_v4, %v563_v4  ;;  %v568_v12 = vmul.f32 %v564_v5, %v564_v5 }
 0x169   : > { %v603_v35 = vpop.permute.xlu0 %602 }
 0x16a   : > { %v569_v13 = vmul.f32 %v565_v9, %v565_v9  ;;  %v570_v14 = vmul.f32 %v566_v10, %v566_v10 }
 0x16b   : > { %v598_v37 = vpop.permute.xlu1 %597 }
 0x16c   : > { %v571_v15 = vadd.f32 %v569_v13, %v567_v11  ;;  %v578_v16 = vadd.f32 %v570_v14, %v568_v12 }
 0x16e   : > { %v572_v17 = vrot.slane %v571_v15, 4  ;;  %v579_v18 = vrot.slane %v578_v16, 4 }
 0x170   : > { %v573_v19 = vadd.f32 %v572_v17, %v571_v15  ;;  %v580_v20 = vadd.f32 %v579_v18, %v578_v16 }
 0x172   : > { %v574_v21 = vrot.slane %v573_v19, 2  ;;  %v581_v22 = vrot.slane %v580_v20, 2 }
 0x174   : > { %v575_v23 = vadd.f32 %v574_v21, %v573_v19  ;;  %v582_v24 = vadd.f32 %v581_v22, %v580_v20 }
 0x176   : > { %v576_v25 = vrot.slane %v575_v23, 1  ;;  %v583_v26 = vrot.slane %v582_v24, 1 }
 0x178   : > { %v577_v27 = vadd.f32 %v576_v25, %v575_v23  ;;  %v584_v28 = vadd.f32 %v583_v26, %v582_v24 }
 0x17a   : > { %v585_v29 = vmax.f32 %v577_v27, 1e-24  ;;  %v586_v30 = vmax.f32 %v584_v28, 1e-24 }
 0x17c   : > { %783 = vrsqrt.f32 %v585_v29 }
 0x17d   : > { %785 = vrsqrt.f32 %v586_v30 }
 0x189   : > { %v784_v31 = vpop.eup %783 }
 0x18a   : > { %v786_v32 = vpop.eup %785  ;;  %v591_v33 = vmul.f32 %v784_v31, %v565_v9  ;;  %v589_v34 = vmul.f32 %v784_v31, %v563_v4 }
 0x18b   : > { %v592_v36 = vmul.f32 %v786_v32, %v566_v10  ;;  %v590_v38 = vmul.f32 %v786_v32, %v564_v5 }
 0x18c   : > { %v607_v39 = vmul.f32 %v603_v35, %v591_v33  ;;  %v605_v40 = vmul.f32 %v598_v37, %v589_v34 }
 0x18d   : > { %v608_v41 = vmul.f32 %v603_v35, %v592_v36  ;;  %v606_v42 = vmul.f32 %v598_v37, %v590_v38 }
 0x18e   : > { %v611_v43 = vmul.f32 0.5, %v607_v39  ;;  %v609_v44 = vmul.f32 0.5, %v605_v40 }
 0x18f   : > { %v612_v45 = vmul.f32 0.5, %v608_v41  ;;  %v610_v46 = vmul.f32 0.5, %v606_v42 }
 0x190   : > { %787 = vtanh.f32 %v611_v43 }
 0x191   : > { %789 = vtanh.f32 %v612_v45 }
 0x192   : > { %791 = vtanh.f32 %v609_v44 }
 0x193   : > { %793 = vtanh.f32 %v610_v46 }
 0x19d   : > { %v788_v47 = vpop.eup %787 }
 0x19e   : > { %v790_v48 = vpop.eup %789  ;;  %v619_v49 = vmul.f32 0.5, %v788_v47 }
 0x19f   : > { %v792_v50 = vpop.eup %791  ;;  %v620_v51 = vmul.f32 0.5, %v790_v48 }
 0x1a0   : > { %v794_v52 = vpop.eup %793  ;;  %v623_v53 = vadd.f32 0.5, %v619_v49  ;;  %v617_v54 = vmul.f32 0.5, %v792_v50 }
 0x1a1   : > { %v624_v55 = vadd.f32 0.5, %v620_v51  ;;  %v618_v56 = vmul.f32 0.5, %v794_v52 }
 0x1a2   : > { %v627_v57 = vmul.f32 %v623_v53, %v607_v39  ;;  %v621_v58 = vadd.f32 0.5, %v617_v54 }
 0x1a3   : > { %v628_v59 = vmul.f32 %v624_v55, %v608_v41  ;;  %v622_v60 = vadd.f32 0.5, %v618_v56 }
 0x1a4   : > { %631 = vst [vmem:[%s218_s6 + $0x10] sm:$0xff] %v627_v57  ;;  %v625_v61 = vmul.f32 %v621_v58, %v605_v40 }
 0x1a5   : > { %632 = vst [vmem:[%s218_s6 + $0x18] sm:$0xff] %v628_v59  ;;  %v626_v62 = vmul.f32 %v622_v60, %v606_v42 }
 0x1a6   : > { %629 = vst [vmem:[%s218_s6] sm:$0xff] %v625_v61 }
 0x1a7   : > { %630 = vst [vmem:[%s218_s6 + $0x8] sm:$0xff] %v626_v62 }
 0x1a8   : > { %808 = shalt.err (!%p805_p3)
}
 0x1a9   : > { %s809_s16 = scalar_lea.hbm %s996_s11, 512  ;;  %s813_s25 = scalar_lea.hbm %s1043_s5, 1024 }
 0x1aa   : > { %p810_p4 = scmp.ne.s32.totalorder %s996_s11, %s809_s16  ;;  %p814_p9 = scmp.lt.s32.totalorder %s996_s11, %s1043_s5 }
 0x1ab   : > { %p815_p10 = scmp.lt.s32.totalorder %s813_s25, %s809_s16 }
 0x1ac   : > { %p811_p7 = pnand %p810_p4, %p933_p5 }
 0x1ad   : > { %p816_p11 = por %p815_p10, %p814_p9 }
 0x1ae   : > { %p812_p8 = pneg %p811_p7 }
 0x1b0   : > { %p817_p12 = pnand %p816_p11, %p812_p8 }
 0x1b2   : > { %820 = shalt.err (!%p817_p12)
}
 0x1b3   : > { %s862_s6 = smov 256   ;;  %s863_s8 = smov 512  }
 0x1b4   : > { %s864_s9 = smov 16  }
 0x1b5   : > { %735 = dma.vmem_to_hbm [thread:$0]  (%p933_p5), %s991_s7, 512, %s996_s11, %s998_s22, %s862_s6, %s863_s8, %s864_s9  }
 0x1b6 PF: > { %p741_p13 = scmp.ge.s32.totalorder %s855_s21, 2  ;;  %s662_s10 = sand.u32 1, %s843_s18  }
 0x1b7   : > { %s663_s12 = scalar_lea.sflag [#allocation3], %s662_s10 }
 0x1b8   : > { %p738_p0 = pnand %p741_p13, %p937_p6 }
 0x1ba   : > { %p739_p1 = pneg %p738_p0 }
 0x1bc   : > { %838 = dma.done.wait (%p739_p1), %s663_s12, 512  }
 0x1bd   : > { %840 = vsyncadd (%p739_p1), %s663_s12, 4294966784  ;;  %p15_p2 = scmp.ge.s32.totalorder %s920_s24, 4   ;;  %s1046_s18 = smov %s847_s19 }
 0x1be   : > { %s1047_s19 = smov %s851_s20  ;;  %s1048_s20 = smov %s931_s27 }
 0x1bf   : > { %s1049_s21 = smov %s920_s24  ;;  %17 = sbr.rel (!%p15_p2) target bundleno = 3 (0x3), region = 78 }
 0x1c4   :  { %668 = vsyncpa [#allocation3], 1 }
 0x1c5   :  { %670 = vsyncpa [#allocation3 + $0x1], 1 }

</bundles_post_ra>
